<compile_context>
chip_gen: v6e
topology: v6e:2x2x1
jax: 0.10.0
libtpu: 0.0.40
codegen_flags: <defaults>
</compile_context>

<pallas_src>
import jax
import jax.numpy as jnp
from jax import lax
from jax.experimental import pallas as pl
from jax.experimental.pallas import tpu as pltpu


def _make_kernel(K, dil, pad, TB, L, Cin, Cout, has_downsample):
    """One grid step processes TB batch elements, everything resident in VMEM."""

    def kernel(x_ref, w1_ref, b1_ref, w2_ref, b2_ref, *rest):
        if has_downsample:
            wds_ref, bds_ref, o_ref = rest
        else:
            (o_ref,) = rest

        def causal_slab(z_f32, C):
            # z_f32: (C, L) f32 -> (K*C, L) bf16 im2col slab of the K causal
            # dilated taps.  Left-pad with zeros in-register (== pad both
            # sides + chomp for stride 1), then take K shifted static slices.
            if pad > 0:
                zp = jnp.concatenate(
                    [jnp.zeros((C, pad), jnp.float32), z_f32], axis=-1)
            else:
                zp = z_f32
            slab = jnp.concatenate(
                [zp[:, t * dil: t * dil + L] for t in range(K)], axis=0)
            return slab.astype(jnp.bfloat16)

        for bb in range(TB):                       # TB is small & static
            xb = x_ref[bb]                         # (Cin, L) bf16
            x_f32 = xb.astype(jnp.float32)

            # ---- conv1 (causal dilated, single im2col matmul) + bias + ReLU ----
            slab1 = causal_slab(x_f32, Cin)                        # (K*Cin, L)
            h = jnp.dot(w1_ref[...], slab1,
                        preferred_element_type=jnp.float32)        # (Cout, L)
            h = jnp.maximum(h + b1_ref[...], 0.0)  # relu1 (+dropout1 = id)

            # ---- conv2 (causal dilated, single im2col matmul) + bias + ReLU ----
            slab2 = causal_slab(h, Cout)                           # (K*Cout, L)
            out = jnp.dot(w2_ref[...], slab2,
                          preferred_element_type=jnp.float32)
            out = jnp.maximum(out + b2_ref[...], 0.0)  # relu2 (+dropout2 = id)

            # ---- residual branch ----
            if has_downsample:
                res = jnp.dot(wds_ref[...], xb,
                              preferred_element_type=jnp.float32) + bds_ref[...]
            else:
                res = x_f32

            # ---- final add + ReLU ----
            o_ref[bb] = jnp.maximum(out + res, 0.0).astype(o_ref.dtype)

    return kernel


def temporal_block_forward(x_ncw, params, *, kernel_size, dilation, padding,
                           batch_tile=8):
    """x_ncw: (B, Cin, L) float32/bf16, PyTorch NCW layout. Returns (B, Cout, L)."""
    B, Cin, L = x_ncw.shape
    K, dil, pad = kernel_size, dilation, padding
    w1, b1, w2, b2, wds, bds = params          # w1:(Cout,K*Cin) w2:(Cout,K*Cout)
    Cout = w1.shape[0]
    has_downsample = wds is not None

    # Fold several batch elements into each grid step (per-step overhead
    # otherwise dominates at small B/L).
    TB = min(B, batch_tile)
    if B % TB != 0:
        TB = 1
    grid = (B // TB,)

    # bf16 activations for the MXU (accumulation stays f32 in-kernel).
    xb16 = x_ncw.astype(jnp.bfloat16)

    kernel = _make_kernel(K, dil, pad, TB, L, Cin, Cout, has_downsample)

    in_specs = [
        pl.BlockSpec((TB, Cin, L), lambda i: (i, 0, 0)),
        pl.BlockSpec((Cout, K * Cin), lambda i: (0, 0)),
        pl.BlockSpec((Cout, 1), lambda i: (0, 0)),
        pl.BlockSpec((Cout, K * Cout), lambda i: (0, 0)),
        pl.BlockSpec((Cout, 1), lambda i: (0, 0)),
    ]
    args = [xb16, w1, b1, w2, b2]
    if has_downsample:
        in_specs += [pl.BlockSpec((Cout, Cin), lambda i: (0, 0)),
                     pl.BlockSpec((Cout, 1), lambda i: (0, 0))]
        args += [wds, bds]

    out = pl.pallas_call(
        kernel,
        out_shape=jax.ShapeDtypeStruct((B, Cout, L), jnp.float32),
        grid_spec=pltpu.PrefetchScalarGridSpec(
            num_scalar_prefetch=0,
            grid=grid,
            in_specs=in_specs,
            out_specs=pl.BlockSpec((TB, Cout, L), lambda i: (i, 0, 0)),
        ),
        compiler_params=pltpu.CompilerParams(
            dimension_semantics=("parallel",)),
    )(*args)
    return out


def make_params(key, n_inputs, n_outputs, kernel_size):
    """Deterministic synthetic parameters.

    weight_norm reparameterizes w = g * v / ||v||_2 (norm per output channel
    over (in, k)); v ~ N(0, 0.01) (as in init_weights) with a deterministic g,
    folded into the effective conv weight.
    """
    ks = jax.random.split(key, 8)

    def wn_weight(kv, kg, cout, cin, K):
        v = 0.01 * jax.random.normal(kv, (cout, cin, K), jnp.float32)   # (O,I,W)
        g = 1.0 + 0.1 * jax.random.normal(kg, (cout, 1, 1), jnp.float32)
        norm = jnp.sqrt(jnp.sum(v * v, axis=(1, 2), keepdims=True))
        return g * v / norm                                             # (O,I,W)

    w1_oiw = wn_weight(ks[0], ks[1], n_outputs, n_inputs, kernel_size)
    w2_oiw = wn_weight(ks[2], ks[3], n_outputs, n_outputs, kernel_size)
    b1 = 0.1 * jax.random.normal(ks[4], (n_outputs,), jnp.float32)
    b2 = 0.1 * jax.random.normal(ks[5], (n_outputs,), jnp.float32)

    if n_inputs != n_outputs:
        wds_oiw = 0.01 * jax.random.normal(ks[6], (n_outputs, n_inputs, 1),
                                           jnp.float32)
        bds = 0.1 * jax.random.normal(ks[7], (n_outputs,), jnp.float32)
    else:
        wds_oiw, bds = None, None

    def im2col_w(w_oiw):
        # (O, I, W) -> (O, W*I), tap-major to match the kernel's slab order.
        O, I, W = w_oiw.shape
        return jnp.transpose(w_oiw, (0, 2, 1)).reshape(O, W * I).astype(jnp.bfloat16)

    params = (
        im2col_w(w1_oiw), b1[:, None],
        im2col_w(w2_oiw), b2[:, None],
        None if wds_oiw is None else wds_oiw[:, :, 0].astype(jnp.bfloat16),
        None if bds is None else bds[:, None],
    )
    torch_layout = (w1_oiw, b1, w2_oiw, b2, wds_oiw, bds)
    return params, torch_layout


def reference_forward(x, torch_params, *, kernel_size, dilation, padding,
                      quantize_bf16=False):
    """Pure-JAX reference mirroring the PyTorch module (NCW, conv + chomp)."""
    w1, b1, w2, b2, wds, bds = torch_params
    if quantize_bf16:
        # Mirror the kernel's bf16 matmul operands (accumulation stays f32).
        q = lambda a: None if a is None else a.astype(jnp.bfloat16).astype(jnp.float32)
        x, w1, w2, wds = q(x), q(w1), q(w2), q(wds)
    dn = ("NCW", "OIW", "NCW")

    def causal_conv(inp, w, b):
        y = lax.conv_general_dilated(inp, w, window_strides=(1,),
                                     padding=[(padding, padding)],
                                     rhs_dilation=(dilation,),
                                     dimension_numbers=dn)
        y = y[:, :, :-padding]                      # Chomp1d
        return y + b[None, :, None]

    h = jax.nn.relu(causal_conv(x, w1, b1))
    out = jax.nn.relu(causal_conv(h, w2, b2))
    if wds is None:
        res = x
    else:
        res = lax.conv_general_dilated(x, wds, window_strides=(1,),
                                       padding=[(0, 0)],
                                       dimension_numbers=dn) + bds[None, :, None]
    return jax.nn.relu(out + res)


if __name__ == "__main__":
    # Small shapes consistent with the module: (Batch, input_channel, seq_len)
    B, Cin, Cout, L = 2, 4, 8, 16
    kernel_size, stride, dilation = 3, 1, 2
    padding = (kernel_size - 1) * dilation          # standard TCN causal padding
    assert stride == 1, "Chomp1d-based TCN block assumes stride == 1"

    key = jax.random.PRNGKey(0)
    kx, kp = jax.random.split(key)
    x = jax.random.normal(kx, (B, Cin, L), jnp.float32)

    params, torch_params = make_params(kp, Cin, Cout, kernel_size)

    out = temporal_block_forward(x, params, kernel_size=kernel_size,
                                 dilation=dilation, padding=padding)
    out = jax.block_until_ready(out)

    ref = reference_forward(x, torch_params, kernel_size=kernel_size,
                            dilation=dilation, padding=padding,
                            quantize_bf16=True)
    assert out.shape == (B, Cout, L)
    # bf16 matmul operands (incl. the hidden activation) => loosened tolerance.
    assert jnp.allclose(out, ref, atol=5e-2, rtol=5e-2), \
        f"max err {jnp.max(jnp.abs(out - ref))}"

    print("KERNEL_OK")
</pallas_src>

<mosaic_0001>
module attributes {stable_mosaic.version = 11 : i64} {
  func.func @kernel(%arg0: i32, %arg1: memref<2x4x16xbf16, #tpu.memory_space<vmem>>, %arg2: memref<8x12xbf16, #tpu.memory_space<vmem>>, %arg3: memref<8x1xf32, #tpu.memory_space<vmem>>, %arg4: memref<8x24xbf16, #tpu.memory_space<vmem>>, %arg5: memref<8x1xf32, #tpu.memory_space<vmem>>, %arg6: memref<8x4xbf16, #tpu.memory_space<vmem>>, %arg7: memref<8x1xf32, #tpu.memory_space<vmem>>, %arg8: memref<2x8x16xf32, #tpu.memory_space<vmem>>) attributes {dimension_semantics = [#tpu.dimension_semantics<parallel>], iteration_bounds = array<i64: 1>, scalar_prefetch = 0 : i64, scratch_operands = 0 : i64, tpu.core_type = #tpu.core_type<tc>, window_params = [{transform_indices = @transform_0, window_bounds = array<i64: 2, 4, 16>}, {pipeline_mode = #tpu.pipeline_mode<synchronous>, transform_indices = @transform_1, window_bounds = array<i64: 8, 12>}, {pipeline_mode = #tpu.pipeline_mode<synchronous>, transform_indices = @transform_2, window_bounds = array<i64: 8, 1>}, {pipeline_mode = #tpu.pipeline_mode<synchronous>, transform_indices = @transform_3, window_bounds = array<i64: 8, 24>}, {pipeline_mode = #tpu.pipeline_mode<synchronous>, transform_indices = @transform_4, window_bounds = array<i64: 8, 1>}, {pipeline_mode = #tpu.pipeline_mode<synchronous>, transform_indices = @transform_5, window_bounds = array<i64: 8, 4>}, {pipeline_mode = #tpu.pipeline_mode<synchronous>, transform_indices = @transform_6, window_bounds = array<i64: 8, 1>}, {transform_indices = @transform_7, window_bounds = array<i64: 2, 8, 16>}]} {
    %c0 = arith.constant 0 : index
    %c0_0 = arith.constant 0 : index
    %c0_1 = arith.constant 0 : index
    %0 = vector.load %arg1[%c0, %c0_0, %c0_1] : memref<2x4x16xbf16, #tpu.memory_space<vmem>>, vector<1x4x16xbf16>
    %1 = vector.shape_cast %0 : vector<1x4x16xbf16> to vector<4x16xbf16>
    %2 = arith.extf %1 : vector<4x16xbf16> to vector<4x16xf32>
    %cst = arith.constant 0.000000e+00 : f32
    %3 = vector.broadcast %cst : f32 to vector<4x4xf32>
    %4 = tpu.concatenate %3, %2 in 1 : vector<4x4xf32>, vector<4x16xf32> -> vector<4x20xf32>
    %5 = vector.extract_strided_slice %4 {offsets = [0, 0], sizes = [4, 16], strides = [1, 1]} : vector<4x20xf32> to vector<4x16xf32>
    %6 = vector.extract_strided_slice %4 {offsets = [0, 2], sizes = [4, 16], strides = [1, 1]} : vector<4x20xf32> to vector<4x16xf32>
    %7 = vector.extract_strided_slice %4 {offsets = [0, 4], sizes = [4, 16], strides = [1, 1]} : vector<4x20xf32> to vector<4x16xf32>
    %8 = tpu.concatenate %5, %6, %7 in 0 : vector<4x16xf32>, vector<4x16xf32>, vector<4x16xf32> -> vector<12x16xf32>
    %9 = arith.truncf %8 : vector<12x16xf32> to vector<12x16xbf16>
    %c0_2 = arith.constant 0 : index
    %c0_3 = arith.constant 0 : index
    %10 = vector.load %arg2[%c0_2, %c0_3] : memref<8x12xbf16, #tpu.memory_space<vmem>>, vector<8x12xbf16>
    %cst_4 = arith.constant dense<0.000000e+00> : vector<8x16xf32>
    %11 = tpu.matmul %10, %9, %cst_4 {dimension_numbers = #tpu.dot_dimension_numbers<[1], [0], [0], [1], [0, 0, 1, 1], [], []>} : vector<8x12xbf16>, vector<12x16xbf16>, vector<8x16xf32> -> vector<8x16xf32>
    %c0_5 = arith.constant 0 : index
    %c0_6 = arith.constant 0 : index
    %12 = vector.load %arg3[%c0_5, %c0_6] : memref<8x1xf32, #tpu.memory_space<vmem>>, vector<8x1xf32>
    %13 = vector.broadcast %12 : vector<8x1xf32> to vector<8x16xf32>
    %14 = arith.addf %11, %13 : vector<8x16xf32>
    %cst_7 = arith.constant 0.000000e+00 : f32
    %15 = vector.broadcast %cst_7 : f32 to vector<8x16xf32>
    %16 = arith.maximumf %14, %15 : vector<8x16xf32>
    %cst_8 = arith.constant 0.000000e+00 : f32
    %17 = vector.broadcast %cst_8 : f32 to vector<8x4xf32>
    %18 = tpu.concatenate %17, %16 in 1 : vector<8x4xf32>, vector<8x16xf32> -> vector<8x20xf32>
    %19 = vector.extract_strided_slice %18 {offsets = [0, 0], sizes = [8, 16], strides = [1, 1]} : vector<8x20xf32> to vector<8x16xf32>
    %20 = vector.extract_strided_slice %18 {offsets = [0, 2], sizes = [8, 16], strides = [1, 1]} : vector<8x20xf32> to vector<8x16xf32>
    %21 = vector.extract_strided_slice %18 {offsets = [0, 4], sizes = [8, 16], strides = [1, 1]} : vector<8x20xf32> to vector<8x16xf32>
    %22 = tpu.concatenate %19, %20, %21 in 0 : vector<8x16xf32>, vector<8x16xf32>, vector<8x16xf32> -> vector<24x16xf32>
    %23 = arith.truncf %22 : vector<24x16xf32> to vector<24x16xbf16>
    %c0_9 = arith.constant 0 : index
    %c0_10 = arith.constant 0 : index
    %24 = vector.load %arg4[%c0_9, %c0_10] : memref<8x24xbf16, #tpu.memory_space<vmem>>, vector<8x24xbf16>
    %cst_11 = arith.constant dense<0.000000e+00> : vector<8x16xf32>
    %25 = tpu.matmul %24, %23, %cst_11 {dimension_numbers = #tpu.dot_dimension_numbers<[1], [0], [0], [1], [0, 0, 1, 1], [], []>} : vector<8x24xbf16>, vector<24x16xbf16>, vector<8x16xf32> -> vector<8x16xf32>
    %c0_12 = arith.constant 0 : index
    %c0_13 = arith.constant 0 : index
    %26 = vector.load %arg5[%c0_12, %c0_13] : memref<8x1xf32, #tpu.memory_space<vmem>>, vector<8x1xf32>
    %27 = vector.broadcast %26 : vector<8x1xf32> to vector<8x16xf32>
    %28 = arith.addf %25, %27 : vector<8x16xf32>
    %cst_14 = arith.constant 0.000000e+00 : f32
    %29 = vector.broadcast %cst_14 : f32 to vector<8x16xf32>
    %30 = arith.maximumf %28, %29 : vector<8x16xf32>
    %c0_15 = arith.constant 0 : index
    %c0_16 = arith.constant 0 : index
    %31 = vector.load %arg6[%c0_15, %c0_16] : memref<8x4xbf16, #tpu.memory_space<vmem>>, vector<8x4xbf16>
    %cst_17 = arith.constant dense<0.000000e+00> : vector<8x16xf32>
    %32 = tpu.matmul %31, %1, %cst_17 {dimension_numbers = #tpu.dot_dimension_numbers<[1], [0], [0], [1], [0, 0, 1, 1], [], []>} : vector<8x4xbf16>, vector<4x16xbf16>, vector<8x16xf32> -> vector<8x16xf32>
    %c0_18 = arith.constant 0 : index
    %c0_19 = arith.constant 0 : index
    %33 = vector.load %arg7[%c0_18, %c0_19] : memref<8x1xf32, #tpu.memory_space<vmem>>, vector<8x1xf32>
    %34 = vector.broadcast %33 : vector<8x1xf32> to vector<8x16xf32>
    %35 = arith.addf %32, %34 : vector<8x16xf32>
    %36 = arith.addf %30, %35 : vector<8x16xf32>
    %cst_20 = arith.constant 0.000000e+00 : f32
    %37 = vector.broadcast %cst_20 : f32 to vector<8x16xf32>
    %38 = arith.maximumf %36, %37 : vector<8x16xf32>
    %c0_21 = arith.constant 0 : index
    %c0_22 = arith.constant 0 : index
    %c0_23 = arith.constant 0 : index
    %39 = vector.load %arg8[%c0_21, %c0_22, %c0_23] : memref<2x8x16xf32, #tpu.memory_space<vmem>>, vector<1x8x16xf32>
    %40 = vector.shape_cast %39 : vector<1x8x16xf32> to vector<8x16xf32>
    %41 = vector.shape_cast %38 : vector<8x16xf32> to vector<1x8x16xf32>
    tpu.vector_store %arg8[%c0_21, %c0_22, %c0_23], %41 {strides = array<i32>} : memref<2x8x16xf32, #tpu.memory_space<vmem>>, vector<1x8x16xf32>,
    %c1 = arith.constant 1 : index
    %c0_24 = arith.constant 0 : index
    %c0_25 = arith.constant 0 : index
    %42 = vector.load %arg1[%c1, %c0_24, %c0_25] : memref<2x4x16xbf16, #tpu.memory_space<vmem>>, vector<1x4x16xbf16>
    %43 = vector.shape_cast %42 : vector<1x4x16xbf16> to vector<4x16xbf16>
    %44 = arith.extf %43 : vector<4x16xbf16> to vector<4x16xf32>
    %cst_26 = arith.constant 0.000000e+00 : f32
    %45 = vector.broadcast %cst_26 : f32 to vector<4x4xf32>
    %46 = tpu.concatenate %45, %44 in 1 : vector<4x4xf32>, vector<4x16xf32> -> vector<4x20xf32>
    %47 = vector.extract_strided_slice %46 {offsets = [0, 0], sizes = [4, 16], strides = [1, 1]} : vector<4x20xf32> to vector<4x16xf32>
    %48 = vector.extract_strided_slice %46 {offsets = [0, 2], sizes = [4, 16], strides = [1, 1]} : vector<4x20xf32> to vector<4x16xf32>
    %49 = vector.extract_strided_slice %46 {offsets = [0, 4], sizes = [4, 16], strides = [1, 1]} : vector<4x20xf32> to vector<4x16xf32>
    %50 = tpu.concatenate %47, %48, %49 in 0 : vector<4x16xf32>, vector<4x16xf32>, vector<4x16xf32> -> vector<12x16xf32>
    %51 = arith.truncf %50 : vector<12x16xf32> to vector<12x16xbf16>
    %c0_27 = arith.constant 0 : index
    %c0_28 = arith.constant 0 : index
    %52 = vector.load %arg2[%c0_27, %c0_28] : memref<8x12xbf16, #tpu.memory_space<vmem>>, vector<8x12xbf16>
    %cst_29 = arith.constant dense<0.000000e+00> : vector<8x16xf32>
    %53 = tpu.matmul %52, %51, %cst_29 {dimension_numbers = #tpu.dot_dimension_numbers<[1], [0], [0], [1], [0, 0, 1, 1], [], []>} : vector<8x12xbf16>, vector<12x16xbf16>, vector<8x16xf32> -> vector<8x16xf32>
    %c0_30 = arith.constant 0 : index
    %c0_31 = arith.constant 0 : index
    %54 = vector.load %arg3[%c0_30, %c0_31] : memref<8x1xf32, #tpu.memory_space<vmem>>, vector<8x1xf32>
    %55 = vector.broadcast %54 : vector<8x1xf32> to vector<8x16xf32>
    %56 = arith.addf %53, %55 : vector<8x16xf32>
    %cst_32 = arith.constant 0.000000e+00 : f32
    %57 = vector.broadcast %cst_32 : f32 to vector<8x16xf32>
    %58 = arith.maximumf %56, %57 : vector<8x16xf32>
    %cst_33 = arith.constant 0.000000e+00 : f32
    %59 = vector.broadcast %cst_33 : f32 to vector<8x4xf32>
    %60 = tpu.concatenate %59, %58 in 1 : vector<8x4xf32>, vector<8x16xf32> -> vector<8x20xf32>
    %61 = vector.extract_strided_slice %60 {offsets = [0, 0], sizes = [8, 16], strides = [1, 1]} : vector<8x20xf32> to vector<8x16xf32>
    %62 = vector.extract_strided_slice %60 {offsets = [0, 2], sizes = [8, 16], strides = [1, 1]} : vector<8x20xf32> to vector<8x16xf32>
    %63 = vector.extract_strided_slice %60 {offsets = [0, 4], sizes = [8, 16], strides = [1, 1]} : vector<8x20xf32> to vector<8x16xf32>
    %64 = tpu.concatenate %61, %62, %63 in 0 : vector<8x16xf32>, vector<8x16xf32>, vector<8x16xf32> -> vector<24x16xf32>
    %65 = arith.truncf %64 : vector<24x16xf32> to vector<24x16xbf16>
    %c0_34 = arith.constant 0 : index
    %c0_35 = arith.constant 0 : index
    %66 = vector.load %arg4[%c0_34, %c0_35] : memref<8x24xbf16, #tpu.memory_space<vmem>>, vector<8x24xbf16>
    %cst_36 = arith.constant dense<0.000000e+00> : vector<8x16xf32>
    %67 = tpu.matmul %66, %65, %cst_36 {dimension_numbers = #tpu.dot_dimension_numbers<[1], [0], [0], [1], [0, 0, 1, 1], [], []>} : vector<8x24xbf16>, vector<24x16xbf16>, vector<8x16xf32> -> vector<8x16xf32>
    %c0_37 = arith.constant 0 : index
    %c0_38 = arith.constant 0 : index
    %68 = vector.load %arg5[%c0_37, %c0_38] : memref<8x1xf32, #tpu.memory_space<vmem>>, vector<8x1xf32>
    %69 = vector.broadcast %68 : vector<8x1xf32> to vector<8x16xf32>
    %70 = arith.addf %67, %69 : vector<8x16xf32>
    %cst_39 = arith.constant 0.000000e+00 : f32
    %71 = vector.broadcast %cst_39 : f32 to vector<8x16xf32>
    %72 = arith.maximumf %70, %71 : vector<8x16xf32>
    %c0_40 = arith.constant 0 : index
    %c0_41 = arith.constant 0 : index
    %73 = vector.load %arg6[%c0_40, %c0_41] : memref<8x4xbf16, #tpu.memory_space<vmem>>, vector<8x4xbf16>
    %cst_42 = arith.constant dense<0.000000e+00> : vector<8x16xf32>
    %74 = tpu.matmul %73, %43, %cst_42 {dimension_numbers = #tpu.dot_dimension_numbers<[1], [0], [0], [1], [0, 0, 1, 1], [], []>} : vector<8x4xbf16>, vector<4x16xbf16>, vector<8x16xf32> -> vector<8x16xf32>
    %c0_43 = arith.constant 0 : index
    %c0_44 = arith.constant 0 : index
    %75 = vector.load %arg7[%c0_43, %c0_44] : memref<8x1xf32, #tpu.memory_space<vmem>>, vector<8x1xf32>
    %76 = vector.broadcast %75 : vector<8x1xf32> to vector<8x16xf32>
    %77 = arith.addf %74, %76 : vector<8x16xf32>
    %78 = arith.addf %72, %77 : vector<8x16xf32>
    %cst_45 = arith.constant 0.000000e+00 : f32
    %79 = vector.broadcast %cst_45 : f32 to vector<8x16xf32>
    %80 = arith.maximumf %78, %79 : vector<8x16xf32>
    %c1_46 = arith.constant 1 : index
    %c0_47 = arith.constant 0 : index
    %c0_48 = arith.constant 0 : index
    %81 = vector.load %arg8[%c1_46, %c0_47, %c0_48] : memref<2x8x16xf32, #tpu.memory_space<vmem>>, vector<1x8x16xf32>
    %82 = vector.shape_cast %81 : vector<1x8x16xf32> to vector<8x16xf32>
    %83 = vector.shape_cast %80 : vector<8x16xf32> to vector<1x8x16xf32>
    tpu.vector_store %arg8[%c1_46, %c0_47, %c0_48], %83 {strides = array<i32>} : memref<2x8x16xf32, #tpu.memory_space<vmem>>, vector<1x8x16xf32>,
    return
  }
  func.func @transform_0(%arg0: i32) -> (i32, i32, i32) {
    %c0_i32 = arith.constant 0 : i32
    %c0_i32_0 = arith.constant 0 : i32
    %c0_i32_1 = arith.constant 0 : i32
    return %arg0, %c0_i32, %c0_i32_0 : i32, i32, i32
  }
  func.func @transform_1(%arg0: i32) -> (i32, i32) {
    %c0_i32 = arith.constant 0 : i32
    %c0_i32_0 = arith.constant 0 : i32
    %c0_i32_1 = arith.constant 0 : i32
    return %c0_i32, %c0_i32_0 : i32, i32
  }
  func.func @transform_2(%arg0: i32) -> (i32, i32) {
    %c0_i32 = arith.constant 0 : i32
    %c0_i32_0 = arith.constant 0 : i32
    %c0_i32_1 = arith.constant 0 : i32
    return %c0_i32, %c0_i32_0 : i32, i32
  }
  func.func @transform_3(%arg0: i32) -> (i32, i32) {
    %c0_i32 = arith.constant 0 : i32
    %c0_i32_0 = arith.constant 0 : i32
    %c0_i32_1 = arith.constant 0 : i32
    return %c0_i32, %c0_i32_0 : i32, i32
  }
  func.func @transform_4(%arg0: i32) -> (i32, i32) {
    %c0_i32 = arith.constant 0 : i32
    %c0_i32_0 = arith.constant 0 : i32
    %c0_i32_1 = arith.constant 0 : i32
    return %c0_i32, %c0_i32_0 : i32, i32
  }
  func.func @transform_5(%arg0: i32) -> (i32, i32) {
    %c0_i32 = arith.constant 0 : i32
    %c0_i32_0 = arith.constant 0 : i32
    %c0_i32_1 = arith.constant 0 : i32
    return %c0_i32, %c0_i32_0 : i32, i32
  }
  func.func @transform_6(%arg0: i32) -> (i32, i32) {
    %c0_i32 = arith.constant 0 : i32
    %c0_i32_0 = arith.constant 0 : i32
    %c0_i32_1 = arith.constant 0 : i32
    return %c0_i32, %c0_i32_0 : i32, i32
  }
  func.func @transform_7(%arg0: i32) -> (i32, i32, i32) {
    %c0_i32 = arith.constant 0 : i32
    %c0_i32_0 = arith.constant 0 : i32
    %c0_i32_1 = arith.constant 0 : i32
    return %arg0, %c0_i32, %c0_i32_0 : i32, i32, i32
  }
}

</mosaic_0001>

<bundles_post_ra>
// kernel: tpu_custom_call.1
= control target key start
LH: loop header
LB: loop body
LE: loop exit
PB: predicated region body
PF: predicated region fallthrough
CT: control target
= control target key end

     0   :  { %s695_s0 = inlined_call_operand.vmem [shape: bf16[2,4,16], index: 0, kind: input, shape index: {}]   ;;  %s696_s1 = inlined_call_operand.vmem [shape: bf16[8,12], index: 1, kind: input, shape index: {}]   ;;  %s697_s2 = inlined_call_operand.vmem [shape: f32[8,1], index: 2, kind: input, shape index: {}]   ;;  %s698_s3 = inlined_call_operand.vmem [shape: bf16[8,24], index: 3, kind: input, shape index: {}]   ;;  %s699_s4 = inlined_call_operand.vmem [shape: f32[8,1], index: 4, kind: input, shape index: {}]   ;;  %s700_s5 = inlined_call_operand.vmem [shape: bf16[8,4], index: 5, kind: input, shape index: {}]   ;;  %s701_s6 = inlined_call_operand.vmem [shape: f32[8,1], index: 6, kind: input, shape index: {}]   ;;  %s702_s7 = inlined_call_operand.hbm [shape: f32[2,8,16], index: 7, kind: output, shape index: {}]  }
   0x1   :  { %v599_v0 = vld [vmem:[%s695_s0] sm:$0x3] }
   0x2   :  { %v29_v1 = vunpack.c.l.bf16 %v599_v0 }
   0x3   :  { %12 = vsyncpa [#allocation3], 0  ;;  %s546_s26 = smov 4   ;;  %v547_v2 = vmov 0.0   ;;  %vm548_vm0 = vmmov 0   ;;  %vm34_vm1 = vcmask 31744  }
   0x4   :  { %31 = vrot.lane.b32.xlu0 %v29_v1, %s546_s26  ;;  %472 = vmatprep.subr.bf16.mxu0 %v547_v2  ;;  %v549_v3 = vmov 0   ;;  %s550_s27 = smov 124   ;;  %v48_v7 = vld [vmem:[%s697_s2] sm:$0xff]  ;;  %s551_s30 = smov 126   ;;  %vm44_vm2 = vcmask 1043456   ;;  %vm58_vm3 = vcmask 1045504   ;;  %vm444_vm5 = vmneg %vm34_vm1 }
   0x5   :  { %478 = vmatprep.subr.bf16.mxu1 %v547_v2  ;;  %474 = vmatprep.mubr.msk.bf16.mxu0 %vm548_vm0, %v547_v2  ;;  %v47_v13 = vld [vmem:[%s696_s1] sm:$0xf]  ;;  %vm54_vm4 = vcmask 97280   ;;  %vm552_vm6 = vmmov 1   ;;  %vm124_vm8 = vcmask 195584   ;;  %vm182_vm9 = vcmask 1041408  }
   0x6   :  { %482 = vmatprep.mubr.msk.bf16.mxu1 %vm548_vm0, %v547_v2  ;;  %522 = vset.pattern.permute.xlu1 %v549_v3  ;;  %v450_v14 = vld [vmem:[%s695_s0 + $0x2] sm:$0x3]  ;;  %vm639_vm7 = vmpackc.low %vm552_vm6, %vm444_vm5  ;;  %v184_v41 = vsel %vm182_vm9, %v599_v0, 0  ;;  %vm228_vm10 = vcmask 130048  }
   0x7   :  { %523 = vset.pattern.permute.xlu0 %v549_v3  ;;  %v232_v15 = vunpack.c.l.bf16 %v450_v14  ;;  %v117_v38 = vld [vmem:[%s698_s3] sm:$0xf]  ;;  %v381_v42 = vsel %vm182_vm9, %v450_v14, 0 }
   0x8   :  { %v248_v40 = vld [vmem:[%s696_s1] sm:$0xf] }
   0x9   :  { %v172_v43 = vld [vmem:[%s700_s5] sm:$0xf] }
   0xa   :  { %v370_v44 = vld [vmem:[%s700_s5] sm:$0xf] }
   0xb   :  { %v317_v58 = vld [vmem:[%s699_s4] sm:$0xff] }
   0xc   :  { %v371_v62 = vld [vmem:[%s701_s6] sm:$0xff] }
  0x76   :  { %v32_v4 = vpop.permute.xlu0 %31 }
  0x77   :  { %v35_v5 = vsel %vm34_vm1, 0.0, %v32_v4 }
  0x78   :  { %v37_v6 = vrot.slane %v35_v5, 4  ;;  %41 = vrot.lane.b32.xlu1 %v35_v5, %s550_s27 }
  0x7a   :  { %38 = vrot.lane.b32.xlu0 %v37_v6, %s551_s30 }
  0x7c   :  { %51 = vperm.xlu1 %522, %v48_v7  }
  0x80   :  { %234 = vrot.lane.b32.xlu1 %v232_v15, %s546_s26 }
  0xea   :  { %v42_v9 = vpop.permute.xlu1 %41 }
  0xec   :  { %v39_v8 = vpop.permute.xlu0 %38 }
  0xed   :  { %v45_v10 = vsel %vm44_vm2, %v35_v5, %v39_v8 }
  0xee   :  { %v46_v11 = vpack.c.bf16 %v42_v9, %v45_v10  ;;  %v316_v10 = vld [vmem:[%s698_s3] sm:$0xf]  ;;  %s553_s3 = smov [#allocation2]  }
  0xef   :  { %s432_s20 = sshll.u32 %s553_s3, 4  ;;  %s433_s20 = int_to_ptr.vmem [resolvable:$true] %s432_s20 }
  0xf0   :  { %v60_v12 = vsel %vm58_vm3, %v46_v11, 0  ;;  %s524_s21 = scalar_lea.vmem %s433_s20, 256  ;;  %p529_p1 = scmp.lt.s32.totalorder %s433_s20, %s433_s20 }
  0xf1   :  { %473 = vmatpush3.bf16.msra.mxu0 %v60_v12  ;;  %p525_p0 = scmp.ne.s32.totalorder %s433_s20, %s524_s21  ;;  %p530_p2 = scmp.lt.s32.totalorder %s524_s21, %s524_s21 }
  0xf2   :  { %486 = vmatprep.subr.bf16.mxu0 %v547_v2 }
  0xf3   :  { %p531_p3 = por %p530_p2, %p529_p1 }
  0xf4   :  { %475 = vmatmul.mubr.msk.bf16.vlgmr.msra.gmra.mxu0 %vm54_vm4, %v47_v13 }
  0xf5   :  { %488 = vmatprep.mubr.msk.bf16.mxu0 %vm548_vm0, %v547_v2  ;;  %487 = vmatpush3.bf16.msra.mxu0 %v184_v41  ;;  %p532_p4 = pnand %p531_p3, %p525_p0 }
  0xf6   :  { %498 = vmatprep.subr.bf16.mxu0 %v547_v2 }
  0xf7   :  { %v52_v16 = vpop.permute.xlu1 %51 }
  0xfb   :  { %v235_v23 = vpop.permute.xlu1 %234 }
  0xfc   :  { %v237_v24 = vsel %vm34_vm1, 0.0, %v235_v23  ;;  %489 = vmatmul.mubr.msk.bf16.vlgmr.msra.gmra.mxu0 %vm34_vm1, %v172_v43 }
  0xfd   :  { %v239_v27 = vrot.slane %v237_v24, 4  ;;  %502 = vmatprep.mubr.msk.bf16.mxu0 %vm548_vm0, %v547_v2 }
 0x1b4   :  { %v96_v17 = vpop.f32.mrf.mxu0 }
 0x1b5   :  { %v97_v18 = vadd.f32 %v96_v17, %v52_v16 }
 0x1b6   :  { %v476_v19 = vpop.f32.mrf.mxu0 }
 0x1b7   :  { %v102_v20 = vmax.f32 %v97_v18, 0.0 }
 0x1b8   :  { %v99_v21 = vpop.f32.mrf.mxu0 }
 0x1b9   :  { %104 = vrot.lane.b32.xlu0 %v102_v20, %s546_s26 }
 0x1ba   :  { %v477_v22 = vpop.f32.mrf.mxu0 }
 0x1bc   :  { %v220_v60 = vpop.f32.mrf.mxu0 }
 0x1be   :  { %v490_v63 = vpop.f32.mrf.mxu0 }
 0x1c0   :  { %v223_v1 = vpop.f32.mrf.mxu0 }
 0x1c2   :  { %v491_v4 = vpop.f32.mrf.mxu0 }
 0x22b   :  { %v105_v25 = vpop.permute.xlu0 %104 }
 0x22c   :  { %v107_v26 = vsel %vm34_vm1, 0.0, %v105_v25 }
 0x22d   :  { %109 = vrot.lane.b32.xlu1 %v107_v26, %s551_s30  ;;  %112 = vrot.lane.b32.xlu0 %v107_v26, %s550_s27 }
 0x231   :  { %240 = vrot.lane.b32.xlu0 %v239_v27, %s551_s30  ;;  %243 = vrot.lane.b32.xlu1 %v237_v24, %s550_s27 }
 0x235   :  { %252 = vperm.xlu0 %523, %v48_v7  }
 0x29f   :  { %v110_v28 = vpop.permute.xlu1 %109  ;;  %v113_v29 = vpop.permute.xlu0 %112 }
 0x2a0   :  { %v116_v30 = vpack.c.bf16 %v113_v29, %v113_v29  ;;  %v446_v36 = vpack.c.bf16 %v110_v28, %v105_v25 }
 0x2a2   :  { %v129_v31 = vsel %vm44_vm2, %v116_v30, 0 }
 0x2a3   :  { %479 = vmatpush3.bf16.msra.mxu1 %v129_v31  ;;  %v241_v32 = vpop.permute.xlu0 %240  ;;  %v244_v33 = vpop.permute.xlu1 %243 }
 0x2a4   :  { %v246_v34 = vsel %vm44_vm2, %v237_v24, %v241_v32  ;;  %480 = vmatprep.subr.bf16.mxu1 %v547_v2 }
 0x2a5   :  { %v247_v37 = vpack.c.bf16 %v244_v33, %v246_v34 }
 0x2a7   :  { %481 = vmatpush3.bf16.msk.msra.mxu1 %vm639_vm7, %v446_v36  ;;  %v259_v39 = vsel %vm58_vm3, %v247_v37, 0 }
 0x2a8   :  { %492 = vmatprep.subr.bf16.mxu1 %v547_v2 }
 0x2aa   :  { %483 = vmatmul.mubr.msk.bf16.vlgmr.msra.gmra.mxu1 %vm124_vm8, %v117_v38 }
 0x2ab   :  { %493 = vmatpush3.bf16.msra.mxu1 %v259_v39  ;;  %494 = vmatprep.mubr.msk.bf16.mxu1 %vm548_vm0, %v547_v2 }
 0x2ac   :  { %506 = vmatprep.subr.bf16.mxu1 %v547_v2 }
 0x2b0   :  { %v253_v49 = vpop.permute.xlu0 %252 }
 0x2b2   :  { %495 = vmatmul.mubr.msk.bf16.vlgmr.msra.gmra.mxu1 %vm54_vm4, %v248_v40 }
 0x2b3   :  { %508 = vmatprep.mubr.msk.bf16.mxu1 %vm548_vm0, %v547_v2  ;;  %507 = vmatpush3.bf16.msra.mxu1 %v381_v42 }
 0x2ba   :  { %509 = vmatmul.mubr.msk.bf16.vlgmr.msra.gmra.mxu1 %vm34_vm1, %v370_v44 }
 0x36a   :  { %v165_v45 = vpop.f32.mrf.mxu1 }
 0x36c   :  { %v484_v46 = vpop.f32.mrf.mxu1 }
 0x36e   :  { %v168_v47 = vpop.f32.mrf.mxu1 }
 0x370   :  { %v485_v48 = vpop.f32.mrf.mxu1 }
 0x372   :  { %v295_v50 = vpop.f32.mrf.mxu1 }
 0x373   :  { %v296_v51 = vadd.f32 %v295_v50, %v253_v49 }
 0x374   :  { %v496_v52 = vpop.f32.mrf.mxu1 }
 0x375   :  { %v301_v53 = vmax.f32 %v296_v51, 0.0 }
 0x376   :  { %v298_v54 = vpop.f32.mrf.mxu1 }
 0x377   :  { %303 = vrot.lane.b32.xlu1 %v301_v53, %s546_s26 }
 0x378   :  { %v497_v55 = vpop.f32.mrf.mxu1 }
 0x37a   :  { %v417_v59 = vpop.f32.mrf.mxu1 }
 0x37c   :  { %v510_v61 = vpop.f32.mrf.mxu1 }
 0x37e   :  { %v420_v0 = vpop.f32.mrf.mxu1 }
 0x380   :  { %v511_v3 = vpop.f32.mrf.mxu1 }
 0x3e9   :  { %v304_v56 = vpop.permute.xlu1 %303 }
 0x3ea   :  { %v306_v57 = vsel %vm34_vm1, 0.0, %v304_v56 }
 0x3eb   :  { %308 = vrot.lane.b32.xlu0 %v306_v57, %s551_s30  ;;  %311 = vrot.lane.b32.xlu1 %v306_v57, %s550_s27 }
 0x3ef   :  { %320 = vperm.xlu0 %523, %v317_v58   ;;  %121 = vperm.xlu1 %522, %v317_v58  }
 0x3f3   :  { %374 = vperm.xlu0 %523, %v371_v62   ;;  %176 = vperm.xlu1 %522, %v371_v62  }
 0x45d   :  { %v312_v5 = vpop.permute.xlu1 %311  ;;  %v309_v7 = vpop.permute.xlu0 %308 }
 0x45e   :  { %v315_v6 = vpack.c.bf16 %v312_v5, %v312_v5  ;;  %v454_v9 = vpack.c.bf16 %v309_v7, %v304_v56 }
 0x460   :  { %v327_v8 = vsel %vm44_vm2, %v315_v6, 0 }
 0x461   :  { %499 = vmatpush3.bf16.msra.mxu0 %v327_v8 }
 0x462   :  { %500 = vmatprep.subr.bf16.mxu0 %v547_v2 }
 0x465   :  { %501 = vmatpush3.bf16.msk.msra.mxu0 %vm639_vm7, %v454_v9 }
 0x468   :  { %503 = vmatmul.mubr.msk.bf16.vlgmr.msra.gmra.mxu0 %vm124_vm8, %v316_v10 }
 0x46a   :  { %v122_v11 = vpop.permute.xlu1 %121  ;;  %v321_v2 = vpop.permute.xlu0 %320 }
 0x46b   :  { %v166_v12 = vadd.f32 %v165_v45, %v122_v11 }
 0x46d   :  { %v171_v14 = vmax.f32 %v166_v12, 0.0 }
 0x46e   :  { %v177_v13 = vpop.permute.xlu1 %176  ;;  %v375_v18 = vpop.permute.xlu0 %374 }
 0x46f   :  { %v221_v15 = vadd.f32 %v220_v60, %v177_v13  ;;  %v418_v22 = vadd.f32 %v417_v59, %v375_v18 }
 0x471   :  { %v226_v16 = vadd.f32 %v221_v15, %v171_v14 }
 0x473   :  { %v227_v17 = vmax.f32 %v226_v16, 0.0 }
 0x475   :  { %229 = vst.msk [vmem:[#allocation2] sm:$0xff] %vm228_vm10, %v227_v17 }
 0x528   :  { %v363_v19 = vpop.f32.mrf.mxu0 }
 0x529   :  { %v364_v20 = vadd.f32 %v363_v19, %v321_v2 }
 0x52a   :  { %v504_v21 = vpop.f32.mrf.mxu0 }
 0x52b   :  { %v369_v23 = vmax.f32 %v364_v20, 0.0 }
 0x52c   :  { %v366_v24 = vpop.f32.mrf.mxu0 }
 0x52d   :  { %v423_v25 = vadd.f32 %v418_v22, %v369_v23 }
 0x52e   :  { %v505_v26 = vpop.f32.mrf.mxu0 }
 0x52f   :  { %v424_v27 = vmax.f32 %v423_v25, 0.0 }
 0x531   :  { %426 = vst.msk [vmem:[#allocation2 + $0x8] sm:$0xff] %vm228_vm10, %v424_v27 }
 0x532   :  { %535 = shalt.err (!%p532_p4)
}
 0x533   :  { %s554_s22 = smov 128   ;;  %s555_s23 = smov 8  }
 0x534   :  { %438 = dma.vmem_to_hbm [thread:$0]  %s433_s20, 256, %s702_s7, [#allocation3], %s554_s22, %s554_s22, %s555_s23  }
 0x535   :  { %544 = dma.done.wait [#allocation3], 256  }
 0x536   :  { %545 = vsyncadd [#allocation3], 4294967040 }
 0x537   :  { %442 = vsyncpa [#allocation3], 1 }

</bundles_post_ra>
